<compile_context>
chip_gen: v5e
topology: v5e:2x2
jax: 0.10.0
libtpu: 0.0.40
codegen_flags: <defaults>
</compile_context>

<pallas_src>
import functools

import jax
import jax.numpy as jnp
from jax.experimental import pallas as pl
from jax.experimental.pallas import tpu as pltpu


def _round_up(x, m):
    return (x + m - 1) // m * m


def mil_kernel(bag_ref, w1_ref, b1_ref, w2_ref, b2_ref, w3_ref, b3_ref, out_ref,
               *, bag_tile, num_instances):
    """One bag-tile of the MIL forward pass.

    bag_ref: (TB*N, F)  pre-flattened instances of TB bags (VMEM block)
    w1_ref:  (F,  Hp)   b1_ref: (1, Hp)
    w2_ref:  (Hp, Hp)   b2_ref: (1, Hp)
    w3_ref:  (Hp, 1)    classifier weight column
    b3_ref:  (1, 1)     scalar classifier bias (SMEM)
    out_ref: (1, TB)    lane-dense per-bag probabilities
    """
    x = bag_ref[...]

    # instance encoder: Linear -> ReLU -> Linear -> ReLU.
    # MXU matmuls with f32 accumulation; bias add / ReLU stay f32.
    h = jnp.dot(x, w1_ref[...], preferred_element_type=jnp.float32)
    h = jnp.maximum(h + b1_ref[...], 0.0)
    h = jnp.dot(h.astype(w2_ref.dtype), w2_ref[...],
                preferred_element_type=jnp.float32)
    h = jnp.maximum(h + b2_ref[...], 0.0)                          # (TB*N, Hp)

    # aggregation: max over the instance axis (torch.max(x, dim=1)[0]).
    # Only the leading (sublane-major) dim is split; the lane dim is untouched.
    hp = h.shape[-1]
    pooled = jnp.max(h.reshape(bag_tile, num_instances, hp), axis=1)  # (TB, Hp)

    # classifier: output width is 1 -> VPU multiply + cross-sublane (XLU)
    # reduce instead of a 1-column MXU matmul; yields a lane-dense (1, TB) row.
    weighted = pooled.T * w3_ref[...]                              # (Hp, TB)
    logits = jnp.sum(weighted, axis=0, keepdims=True) + b3_ref[0, 0]
    out_ref[...] = jax.nn.sigmoid(logits).astype(out_ref.dtype)    # (1, TB)


def mil_forward(bag, params, *, bag_tile=None, lane_pad=128, use_bf16=False):
    """bag: (B, N, F) float32.  Returns (B, 1) float32 bag probabilities."""
    w1, b1, w2, b2, w3, b3 = params
    B, N, F = bag.shape
    H = w1.shape[1]

    # --- pad hidden dim to a lane multiple (zero padding is exact: padded
    #     hidden units are 0 through ReLU and contribute nothing). ---
    Hp = _round_up(H, lane_pad) if lane_pad else H
    if Hp != H:
        w1 = jnp.pad(w1, ((0, 0), (0, Hp - H)))
        b1 = jnp.pad(b1, ((0, 0), (0, Hp - H)))
        w2 = jnp.pad(w2, ((0, Hp - H), (0, Hp - H)))
        b2 = jnp.pad(b2, ((0, 0), (0, Hp - H)))
        w3 = jnp.pad(w3, ((0, Hp - H), (0, 0)))
    b3 = b3.reshape(1, 1)
    # TODO(synk): F (input_dim) is left unpadded; padding it to 128 would trade
    # 8x more HBM bag bytes for full MXU-K utilization (only worth it if
    # compute-bound).

    # --- bag-axis tiling.  Padded bags are computed then dropped; the max-pool
    #     is per-bag so padding never mixes with real bags. ---
    if bag_tile is None:
        bag_tile = min(128, _round_up(B, 8))
    B_pad = _round_up(B, bag_tile)
    if B_pad > bag_tile:
        assert bag_tile % 128 == 0, "multi-tile grids need a lane-aligned bag_tile"
    if B_pad != B:
        bag = jnp.pad(bag, ((0, B_pad - B), (0, 0), (0, 0)))
    grid = (B_pad // bag_tile,)

    # Flatten in XLA (free layout plumbing), not inside the kernel.
    bag2d = bag.reshape(B_pad * N, F)

    # Optional bf16 MXU inputs (v6e/v7x lever); accumulation stays f32.
    mat_dtype = jnp.bfloat16 if use_bf16 else jnp.float32
    bag2d = bag2d.astype(mat_dtype)
    w1m = w1.astype(mat_dtype)
    w2m = w2.astype(mat_dtype)

    kernel = functools.partial(mil_kernel, bag_tile=bag_tile, num_instances=N)

    out_row = pl.pallas_call(
        kernel,
        out_shape=jax.ShapeDtypeStruct((1, B_pad), jnp.float32),
        grid=grid,
        in_specs=[
            # bag tile: pipelined (double-buffered) HBM->VMEM DMA over the grid.
            pl.BlockSpec((bag_tile * N, F), lambda i: (i, 0)),
            # weights / biases: constant index_map -> resident in VMEM.
            pl.BlockSpec((F, Hp), lambda i: (0, 0)),
            pl.BlockSpec((1, Hp), lambda i: (0, 0)),
            pl.BlockSpec((Hp, Hp), lambda i: (0, 0)),
            pl.BlockSpec((1, Hp), lambda i: (0, 0)),
            pl.BlockSpec((Hp, 1), lambda i: (0, 0)),
            # scalar classifier bias in SMEM (no padded VMEM tile / vector DMA).
            pl.BlockSpec((1, 1), lambda i: (0, 0),
                         memory_space=pltpu.MemorySpace.SMEM),
        ],
        # lane-dense output: bags on the lane axis -> unmasked stores.
        out_specs=pl.BlockSpec((1, bag_tile), lambda i: (0, i)),
        compiler_params=pltpu.CompilerParams(
            # bag axis is embarrassingly parallel -> megacore sharding on v7x.
            dimension_semantics=("parallel",),
            # conservative scoped-VMEM cap, safe on v5e/v6e/v7x (v7x has only
            # 64 MiB physical VMEM, so bag_tile is sized against ~32 MiB).
            vmem_limit_bytes=32 * 1024 * 1024,
        ),
    )(bag2d, w1m, b1, w2m, b2, w3, b3)

    return out_row[0, :B].reshape(B, 1)


def init_params(key, input_dim, hidden_dim):
    """Deterministic synthetic parameters (shapes match the nn.Module)."""
    ks = jax.random.split(key, 6)
    w1 = jax.random.normal(ks[0], (input_dim, hidden_dim), jnp.float32) * 0.1
    b1 = jax.random.normal(ks[1], (1, hidden_dim), jnp.float32) * 0.1
    w2 = jax.random.normal(ks[2], (hidden_dim, hidden_dim), jnp.float32) * 0.1
    b2 = jax.random.normal(ks[3], (1, hidden_dim), jnp.float32) * 0.1
    w3 = jax.random.normal(ks[4], (hidden_dim, 1), jnp.float32) * 0.1
    b3 = jax.random.normal(ks[5], (1, 1), jnp.float32) * 0.1
    return (w1, b1, w2, b2, w3, b3)


if __name__ == "__main__":
    B, N, INPUT_DIM, HIDDEN_DIM = 2, 8, 16, 32

    key = jax.random.PRNGKey(0)
    k_bag, k_params = jax.random.split(key)
    bag = jax.random.normal(k_bag, (B, N, INPUT_DIM), jnp.float32)
    params = init_params(k_params, INPUT_DIM, HIDDEN_DIM)

    # f32 MXU path.
    out = mil_forward(bag, params)
    jax.block_until_ready(out)

    # Pure-JAX reference of the same forward semantics (unpadded).
    w1, b1, w2, b2, w3, b3 = params
    x = bag.reshape(B * N, INPUT_DIM)
    h = jnp.maximum(x @ w1 + b1, 0.0)
    h = jnp.maximum(h @ w2 + b2, 0.0)
    pooled = jnp.max(h.reshape(B, N, HIDDEN_DIM), axis=1)
    ref = jax.nn.sigmoid(pooled @ w3 + b3)

    assert out.shape == (B, 1)
    assert jnp.allclose(out, ref, atol=1e-5, rtol=1e-5)

    # bf16 MXU-input path (v6e/v7x lever), f32 accumulation -> loose tolerance.
    out_bf16 = mil_forward(bag, params, use_bf16=True)
    jax.block_until_ready(out_bf16)
    assert out_bf16.shape == (B, 1)
    assert jnp.allclose(out_bf16, ref, atol=2e-2, rtol=2e-2)

    print("KERNEL_OK")
</pallas_src>

<mosaic_0001>
module attributes {stable_mosaic.version = 11 : i64} {
  func.func @mil_kernel(%arg0: i32, %arg1: memref<64x16xf32, #tpu.memory_space<vmem>>, %arg2: memref<16x128xf32, #tpu.memory_space<vmem>>, %arg3: memref<1x128xf32, #tpu.memory_space<vmem>>, %arg4: memref<128x128xf32, #tpu.memory_space<vmem>>, %arg5: memref<1x128xf32, #tpu.memory_space<vmem>>, %arg6: memref<128x1xf32, #tpu.memory_space<vmem>>, %arg7: memref<1x1xf32, #tpu.memory_space<smem>>, %arg8: memref<1x8xf32, #tpu.memory_space<vmem>>) attributes {dimension_semantics = [#tpu.dimension_semantics<parallel>], iteration_bounds = array<i64: 1>, scalar_prefetch = 0 : i64, scratch_operands = 0 : i64, tpu.core_type = #tpu.core_type<tc>, window_params = [{transform_indices = @transform_0, window_bounds = array<i64: 64, 16>}, {pipeline_mode = #tpu.pipeline_mode<synchronous>, transform_indices = @transform_1, window_bounds = array<i64: 16, 128>}, {pipeline_mode = #tpu.pipeline_mode<synchronous>, transform_indices = @transform_2, window_bounds = array<i64: 1, 128>}, {pipeline_mode = #tpu.pipeline_mode<synchronous>, transform_indices = @transform_3, window_bounds = array<i64: 128, 128>}, {pipeline_mode = #tpu.pipeline_mode<synchronous>, transform_indices = @transform_4, window_bounds = array<i64: 1, 128>}, {pipeline_mode = #tpu.pipeline_mode<synchronous>, transform_indices = @transform_5, window_bounds = array<i64: 128, 1>}, {transform_indices = @transform_6, window_bounds = array<i64: 1, 1>}, {transform_indices = @transform_7, window_bounds = array<i64: 1, 8>}]} {
    %c0 = arith.constant 0 : index
    %c0_0 = arith.constant 0 : index
    %0 = vector.load %arg1[%c0, %c0_0] : memref<64x16xf32, #tpu.memory_space<vmem>>, vector<64x16xf32>
    %c0_1 = arith.constant 0 : index
    %c0_2 = arith.constant 0 : index
    %1 = vector.load %arg2[%c0_1, %c0_2] : memref<16x128xf32, #tpu.memory_space<vmem>>, vector<16x128xf32>
    %cst = arith.constant dense<0.000000e+00> : vector<64x128xf32>
    %2 = tpu.matmul %0, %1, %cst {dimension_numbers = #tpu.dot_dimension_numbers<[1], [0], [0], [1], [0, 0, 1, 1], [], []>} : vector<64x16xf32>, vector<16x128xf32>, vector<64x128xf32> -> vector<64x128xf32>
    %c0_3 = arith.constant 0 : index
    %c0_4 = arith.constant 0 : index
    %3 = vector.load %arg3[%c0_3, %c0_4] : memref<1x128xf32, #tpu.memory_space<vmem>>, vector<1x128xf32>
    %4 = vector.broadcast %3 : vector<1x128xf32> to vector<64x128xf32>
    %5 = arith.addf %2, %4 : vector<64x128xf32>
    %cst_5 = arith.constant 0.000000e+00 : f32
    %6 = vector.broadcast %cst_5 : f32 to vector<64x128xf32>
    %7 = arith.maximumf %5, %6 : vector<64x128xf32>
    %c0_6 = arith.constant 0 : index
    %c0_7 = arith.constant 0 : index
    %8 = vector.load %arg4[%c0_6, %c0_7] : memref<128x128xf32, #tpu.memory_space<vmem>>, vector<128x128xf32>
    %cst_8 = arith.constant dense<0.000000e+00> : vector<64x128xf32>
    %9 = tpu.matmul %7, %8, %cst_8 {dimension_numbers = #tpu.dot_dimension_numbers<[1], [0], [0], [1], [0, 0, 1, 1], [], []>} : vector<64x128xf32>, vector<128x128xf32>, vector<64x128xf32> -> vector<64x128xf32>
    %c0_9 = arith.constant 0 : index
    %c0_10 = arith.constant 0 : index
    %10 = vector.load %arg5[%c0_9, %c0_10] : memref<1x128xf32, #tpu.memory_space<vmem>>, vector<1x128xf32>
    %11 = vector.broadcast %10 : vector<1x128xf32> to vector<64x128xf32>
    %12 = arith.addf %9, %11 : vector<64x128xf32>
    %cst_11 = arith.constant 0.000000e+00 : f32
    %13 = vector.broadcast %cst_11 : f32 to vector<64x128xf32>
    %14 = arith.maximumf %12, %13 : vector<64x128xf32>
    %15 = vector.shape_cast %14 : vector<64x128xf32> to vector<8x8x128xf32>
    %cst_12 = arith.constant dense<0xFF800000> : vector<8x128xf32>
    %16 = vector.multi_reduction <maximumf>, %15, %cst_12 [1] : vector<8x8x128xf32> to vector<8x128xf32>
    %17 = tpu.transpose %16, [1, 0] : vector<8x128xf32> -> vector<128x8xf32>
    %c0_13 = arith.constant 0 : index
    %c0_14 = arith.constant 0 : index
    %18 = vector.load %arg6[%c0_13, %c0_14] : memref<128x1xf32, #tpu.memory_space<vmem>>, vector<128x1xf32>
    %19 = vector.broadcast %18 : vector<128x1xf32> to vector<128x8xf32>
    %20 = arith.mulf %17, %19 : vector<128x8xf32>
    %cst_15 = arith.constant dense<0.000000e+00> : vector<8xf32>
    %21 = vector.multi_reduction <add>, %20, %cst_15 [0] : vector<128x8xf32> to vector<8xf32>
    %22 = vector.shape_cast %21 : vector<8xf32> to vector<1x8xf32>
    %c0_16 = arith.constant 0 : index
    %c0_17 = arith.constant 0 : index
    %23 = memref.load %arg7[%c0_16, %c0_17] : memref<1x1xf32, #tpu.memory_space<smem>>
    %24 = vector.broadcast %23 : f32 to vector<1x8xf32>
    %25 = arith.addf %22, %24 : vector<1x8xf32>
    %26 = arith.negf %25 : vector<1x8xf32>
    %27 = math.exp %26 : vector<1x8xf32>
    %cst_18 = arith.constant 1.000000e+00 : f32
    %28 = vector.broadcast %cst_18 : f32 to vector<1x8xf32>
    %29 = arith.addf %28, %27 : vector<1x8xf32>
    %30 = arith.divf %28, %29 : vector<1x8xf32>
    %c0_19 = arith.constant 0 : index
    %c0_20 = arith.constant 0 : index
    %31 = vector.load %arg8[%c0_19, %c0_20] : memref<1x8xf32, #tpu.memory_space<vmem>>, vector<1x8xf32>
    tpu.vector_store %arg8[%c0_19, %c0_20], %30 {strides = array<i32>} : memref<1x8xf32, #tpu.memory_space<vmem>>, vector<1x8xf32>,
    return
  }
  func.func @transform_0(%arg0: i32) -> (i32, i32) {
    %c0_i32 = arith.constant 0 : i32
    %c0_i32_0 = arith.constant 0 : i32
    return %arg0, %c0_i32 : i32, i32
  }
  func.func @transform_1(%arg0: i32) -> (i32, i32) {
    %c0_i32 = arith.constant 0 : i32
    %c0_i32_0 = arith.constant 0 : i32
    %c0_i32_1 = arith.constant 0 : i32
    return %c0_i32, %c0_i32_0 : i32, i32
  }
  func.func @transform_2(%arg0: i32) -> (i32, i32) {
    %c0_i32 = arith.constant 0 : i32
    %c0_i32_0 = arith.constant 0 : i32
    %c0_i32_1 = arith.constant 0 : i32
    return %c0_i32, %c0_i32_0 : i32, i32
  }
  func.func @transform_3(%arg0: i32) -> (i32, i32) {
    %c0_i32 = arith.constant 0 : i32
    %c0_i32_0 = arith.constant 0 : i32
    %c0_i32_1 = arith.constant 0 : i32
    return %c0_i32, %c0_i32_0 : i32, i32
  }
  func.func @transform_4(%arg0: i32) -> (i32, i32) {
    %c0_i32 = arith.constant 0 : i32
    %c0_i32_0 = arith.constant 0 : i32
    %c0_i32_1 = arith.constant 0 : i32
    return %c0_i32, %c0_i32_0 : i32, i32
  }
  func.func @transform_5(%arg0: i32) -> (i32, i32) {
    %c0_i32 = arith.constant 0 : i32
    %c0_i32_0 = arith.constant 0 : i32
    %c0_i32_1 = arith.constant 0 : i32
    return %c0_i32, %c0_i32_0 : i32, i32
  }
  func.func @transform_6(%arg0: i32) -> (i32, i32) {
    %c0_i32 = arith.constant 0 : i32
    %c0_i32_0 = arith.constant 0 : i32
    %c0_i32_1 = arith.constant 0 : i32
    return %c0_i32, %c0_i32_0 : i32, i32
  }
  func.func @transform_7(%arg0: i32) -> (i32, i32) {
    %c0_i32 = arith.constant 0 : i32
    %c0_i32_0 = arith.constant 0 : i32
    return %c0_i32, %arg0 : i32, i32
  }
}

</mosaic_0001>

<bundles_post_ra>
// kernel: tpu_custom_call.1
= control target key start
LH: loop header
LB: loop body
LE: loop exit
PB: predicated region body
PF: predicated region fallthrough
CT: control target
= control target key end

     0   :  { %vm42_vm0 = vcmask 130048   ;;  %s764_s0 = inlined_call_operand.vmem [shape: f32[64,16], index: 0, kind: input, shape index: {}]   ;;  %s765_s1 = inlined_call_operand.vmem [shape: f32[16,128], index: 1, kind: input, shape index: {}]   ;;  %s766_s2 = inlined_call_operand.vmem [shape: f32[1,128], index: 2, kind: input, shape index: {}]   ;;  %s767_s3 = inlined_call_operand.vmem [shape: f32[128,128], index: 3, kind: input, shape index: {}]   ;;  %s768_s4 = inlined_call_operand.vmem [shape: f32[1,128], index: 4, kind: input, shape index: {}]   ;;  %s769_s5 = inlined_call_operand.vmem [shape: f32[128,1], index: 5, kind: input, shape index: {}]   ;;  %s770_s6 = inlined_call_operand.<no memory space> [shape: f32[1,1], index: 6, kind: input, shape index: {}]   ;;  %s771_s7 = inlined_call_operand.hbm [shape: f32[1,8], index: 7, kind: output, shape index: {}]  }
   0x1   :  { %v37_v0 = vld [vmem:[%s765_s1 + $0x8] sm:$0xff]  ;;  %v36_v1 = vld [vmem:[%s765_s1] sm:$0xff] }
   0x2   :  { %81 = vmatpush.msra.mxu0 %v37_v0  ;;  %v28_v2 = vld [vmem:[%s764_s0] sm:$0xff] }
   0x4   :  { %82 = vmatpush.msra.mxu0 %v36_v1 }
   0x5   :  { %13 = vsyncpa [#allocation4], 0  ;;  %478 = vmatmul.msk.f32.vlgmr.msra.gmra.mxu0 %vm42_vm0, %v28_v2  ;;  %v29_v3 = vld [vmem:[%s764_s0 + $0x8] sm:$0xff]  ;;  %v30_v4 = vld [vmem:[%s764_s0 + $0x10] sm:$0xff]  ;;  %vm241_vm1 = vcmask 1041409   ;;  %vm243_vm2 = vcmask 1042434  }
   0x6   :  { %v31_v5 = vld [vmem:[%s764_s0 + $0x18] sm:$0xff]  ;;  %v130_v7 = vld [vmem:[%s767_s3 + $0x70] sm:$0xff]  ;;  %v129_v8 = vld [vmem:[%s767_s3 + $0x68] sm:$0xff]  ;;  %vm245_vm3 = vcmask 1043459   ;;  %vm247_vm4 = vcmask 1044484   ;;  %vm249_vm5 = vcmask 1045509  }
   0x7   :  { %v131_v6 = vld [vmem:[%s767_s3 + $0x78] sm:$0xff]  ;;  %v128_v9 = vld [vmem:[%s767_s3 + $0x60] sm:$0xff]  ;;  %v126_v12 = vld [vmem:[%s767_s3 + $0x50] sm:$0xff]  ;;  %vm251_vm6 = vcmask 1046534   ;;  %vm253_vm7 = vcmask 1047559   ;;  %vm400_vm8 = vcmask 64512  }
   0x8   :  { %136 = vmatpush.msra.mxu1 %v131_v6  ;;  %487 = vmatpush.msra.mxu2 %v131_v6  ;;  %v32_v10 = vld [vmem:[%s764_s0 + $0x20] sm:$0xff]  ;;  %v127_v11 = vld [vmem:[%s767_s3 + $0x58] sm:$0xff]  ;;  %v125_v13 = vld [vmem:[%s767_s3 + $0x48] sm:$0xff]  ;;  %s558_s10 = smov [#allocation3]   ;;  %vm460_vm12 = vcmask 57344  }
   0x9   :  { %488 = vmatpush.msra.mxu3 %v131_v6  ;;  %v124_v14 = vld [vmem:[%s767_s3 + $0x40] sm:$0xff]  ;;  %v33_v15 = vld [vmem:[%s764_s0 + $0x28] sm:$0xff]  ;;  %v123_v16 = vld [vmem:[%s767_s3 + $0x38] sm:$0xff]  ;;  %s467_s1 = sshll.u32 %s558_s10, 4  ;;  %s468_s1 = int_to_ptr.vmem [resolvable:$true] %s467_s1 }
   0xa   :  { %137 = vmatpush.msra.mxu1 %v130_v7  ;;  %489 = vmatpush.msra.mxu2 %v130_v7  ;;  %v122_v17 = vld [vmem:[%s767_s3 + $0x30] sm:$0xff]  ;;  %v121_v18 = vld [vmem:[%s767_s3 + $0x28] sm:$0xff]  ;;  %v120_v19 = vld [vmem:[%s767_s3 + $0x20] sm:$0xff] }
   0xb   :  { %490 = vmatpush.msra.mxu3 %v130_v7  ;;  %v34_v20 = vld [vmem:[%s764_s0 + $0x30] sm:$0xff]  ;;  %v119_v21 = vld [vmem:[%s767_s3 + $0x18] sm:$0xff]  ;;  %v117_v24 = vld [vmem:[%s767_s3 + $0x8] sm:$0xff] }
   0xc   :  { %138 = vmatpush.msra.mxu1 %v129_v8  ;;  %491 = vmatpush.msra.mxu2 %v129_v8  ;;  %v35_v22 = vld [vmem:[%s764_s0 + $0x38] sm:$0xff]  ;;  %v118_v23 = vld [vmem:[%s767_s3 + $0x10] sm:$0xff]  ;;  %v116_v25 = vld [vmem:[%s767_s3] sm:$0xff] }
   0xd   :  { %479 = vmatmul.msk.f32.gmra.mxu0 %vm42_vm0, %v29_v3  ;;  %492 = vmatpush.msra.mxu3 %v129_v8  ;;  %v525_v26 = vld [vmem:[%s766_s2] ss:$0 sm:$0xff]  ;;  %v557_v8 = vmov 0  }
   0xe   :  { %139 = vmatpush.msra.mxu1 %v128_v9  ;;  %493 = vmatpush.msra.mxu2 %v128_v9  ;;  %v526_v54 = vld [vmem:[%s768_s4] ss:$0 sm:$0xff] }
   0xf   :  { %494 = vmatpush.msra.mxu3 %v128_v9  ;;  %523 = vset.pattern.permute.xlu1 %v557_v8  ;;  %v291_v9 = vld [vmem:[%s769_s5 + $0x18] sm:$0xff] }
  0x10   :  { %140 = vmatpush.msra.mxu1 %v127_v11  ;;  %495 = vmatpush.msra.mxu2 %v127_v11 }
  0x11   :  { %496 = vmatpush.msra.mxu3 %v127_v11  ;;  %524 = vset.pattern.permute.xlu2 %v557_v8 }
  0x12   :  { %141 = vmatpush.msra.mxu1 %v126_v12  ;;  %497 = vmatpush.msra.mxu2 %v126_v12 }
  0x13   :  { %498 = vmatpush.msra.mxu3 %v126_v12  ;;  %321 = vperm.xlu2 %524, %v291_v9  }
  0x14   :  { %142 = vmatpush.msra.mxu1 %v125_v13  ;;  %499 = vmatpush.msra.mxu2 %v125_v13 }
  0x15   :  { %480 = vmatmul.msk.f32.gmra.mxu0 %vm42_vm0, %v30_v4  ;;  %500 = vmatpush.msra.mxu3 %v125_v13 }
  0x16   :  { %143 = vmatpush.msra.mxu1 %v124_v14  ;;  %501 = vmatpush.msra.mxu2 %v124_v14 }
  0x17   :  { %502 = vmatpush.msra.mxu3 %v124_v14 }
  0x18   :  { %144 = vmatpush.msra.mxu1 %v123_v16  ;;  %503 = vmatpush.msra.mxu2 %v123_v16 }
  0x19   :  { %504 = vmatpush.msra.mxu3 %v123_v16 }
  0x1a   :  { %145 = vmatpush.msra.mxu1 %v122_v17  ;;  %505 = vmatpush.msra.mxu2 %v122_v17 }
  0x1b   :  { %506 = vmatpush.msra.mxu3 %v122_v17 }
  0x1c   :  { %146 = vmatpush.msra.mxu1 %v121_v18  ;;  %507 = vmatpush.msra.mxu2 %v121_v18 }
  0x1d   :  { %481 = vmatmul.msk.f32.gmra.mxu0 %vm42_vm0, %v31_v5  ;;  %508 = vmatpush.msra.mxu3 %v121_v18  ;;  %v289_v5 = vld [vmem:[%s769_s5 + $0x8] sm:$0xff] }
  0x1e   :  { %147 = vmatpush.msra.mxu1 %v120_v19  ;;  %509 = vmatpush.msra.mxu2 %v120_v19 }
  0x1f   :  { %510 = vmatpush.msra.mxu3 %v120_v19  ;;  %311 = vperm.xlu1 %523, %v289_v5  }
  0x20   :  { %148 = vmatpush.msra.mxu1 %v119_v21  ;;  %511 = vmatpush.msra.mxu2 %v119_v21 }
  0x21   :  { %512 = vmatpush.msra.mxu3 %v119_v21  ;;  %v290_v21 = vld [vmem:[%s769_s5 + $0x10] sm:$0xff] }
  0x22   :  { %149 = vmatpush.msra.mxu1 %v118_v23  ;;  %513 = vmatpush.msra.mxu2 %v118_v23 }
  0x23   :  { %514 = vmatpush.msra.mxu3 %v118_v23 }
  0x24   :  { %150 = vmatpush.msra.mxu1 %v117_v24  ;;  %515 = vmatpush.msra.mxu2 %v117_v24 }
  0x25   :  { %482 = vmatmul.msk.f32.gmra.mxu0 %vm42_vm0, %v32_v10  ;;  %516 = vmatpush.msra.mxu3 %v117_v24 }
  0x26   :  { %151 = vmatpush.msra.mxu1 %v116_v25  ;;  %517 = vmatpush.msra.mxu2 %v116_v25 }
  0x27   :  { %518 = vmatpush.msra.mxu3 %v116_v25  ;;  %316 = vperm.xlu1 %523, %v290_v21  }
  0x2d   :  { %483 = vmatmul.msk.f32.gmra.mxu0 %vm42_vm0, %v33_v15 }
  0x35   :  { %484 = vmatmul.msk.f32.gmra.mxu0 %vm42_vm0, %v34_v20 }
  0x3d   :  { %485 = vmatmul.msk.f32.gmra.mxu0 %vm42_vm0, %v35_v22  ;;  %v292_v22 = vld [vmem:[%s769_s5 + $0x20] sm:$0xff] }
  0x3e   :  { %326 = vperm.xlu2 %524, %v292_v22  }
  0x82   :  { %v84_v27 = vpop.f32.mrf.mxu0 }
  0x83   :  { %v85_v28 = vadd.f32 %v525_v26, %v84_v27 }
  0x85   :  { %v108_v29 = vmax.f32 %v85_v28, 0.0 }
  0x87   :  { %152 = vmatmul.f32.vlgmr.msra.gmra.mxu1 %v108_v29 }
  0x8a   :  { %v87_v30 = vpop.f32.mrf.mxu0 }
  0x8b   :  { %v88_v31 = vadd.f32 %v525_v26, %v87_v30 }
  0x8d   :  { %v109_v32 = vmax.f32 %v88_v31, 0.0 }
  0x8f   :  { %155 = vmatmul.f32.gmra.mxu1 %v109_v32 }
  0x92   :  { %v90_v33 = vpop.f32.mrf.mxu0 }
  0x93   :  { %v91_v34 = vadd.f32 %v525_v26, %v90_v33 }
  0x95   :  { %v110_v35 = vmax.f32 %v91_v34, 0.0 }
  0x97   :  { %158 = vmatmul.f32.gmra.mxu1 %v110_v35 }
  0x9a   :  { %v93_v36 = vpop.f32.mrf.mxu0 }
  0x9b   :  { %v94_v37 = vadd.f32 %v525_v26, %v93_v36 }
  0x9d   :  { %v111_v38 = vmax.f32 %v94_v37, 0.0 }
  0x9f   :  { %161 = vmatmul.f32.vlgmr.msra.gmra.mxu2 %v111_v38 }
  0xa2   :  { %v96_v39 = vpop.f32.mrf.mxu0 }
  0xa3   :  { %v97_v40 = vadd.f32 %v525_v26, %v96_v39 }
  0xa5   :  { %v112_v41 = vmax.f32 %v97_v40, 0.0 }
  0xa7   :  { %164 = vmatmul.f32.vlgmr.msra.gmra.mxu3 %v112_v41  ;;  %v293_v41 = vld [vmem:[%s769_s5 + $0x28] sm:$0xff] }
  0xa8   :  { %331 = vperm.xlu1 %523, %v293_v41  }
  0xaa   :  { %v99_v42 = vpop.f32.mrf.mxu0 }
  0xab   :  { %v100_v43 = vadd.f32 %v525_v26, %v99_v42  ;;  %v294_v42 = vld [vmem:[%s769_s5 + $0x30] sm:$0xff] }
  0xac   :  { %336 = vperm.xlu2 %524, %v294_v42  }
  0xad   :  { %v113_v44 = vmax.f32 %v100_v43, 0.0 }
  0xaf   :  { %167 = vmatmul.f32.gmra.mxu3 %v113_v44 }
  0xb2   :  { %v102_v45 = vpop.f32.mrf.mxu0 }
  0xb3   :  { %v103_v46 = vadd.f32 %v525_v26, %v102_v45 }
  0xb5   :  { %v114_v47 = vmax.f32 %v103_v46, 0.0 }
  0xb7   :  { %170 = vmatmul.f32.gmra.mxu3 %v114_v47 }
  0xba   :  { %v105_v48 = vpop.f32.mrf.mxu0 }
  0xbb   :  { %v106_v49 = vadd.f32 %v525_v26, %v105_v48 }
  0xbd   :  { %v115_v50 = vmax.f32 %v106_v49, 0.0 }
  0xbf   :  { %173 = vmatmul.f32.gmra.mxu3 %v115_v50 }
 0x104   :  { %v153_v51 = vpop.f32.mrf.mxu1 }
 0x105   :  { %v154_v59 = vadd.f32 %v526_v54, %v153_v51 }
 0x107   :  { %v177_v1 = vmax.f32 %v154_v59, 0.0 }
 0x109   :  { %v185_v11 = vrot.slane %v177_v1, 4 }
 0x10b   :  { %v186_v18 = vmax.f32 %v177_v1, %v185_v11 }
 0x10c   :  { %v156_v52 = vpop.f32.mrf.mxu1 }
 0x10d   :  { %v157_v57 = vadd.f32 %v526_v54, %v156_v52  ;;  %v187_v28 = vrot.slane %v186_v18, 2 }
 0x10f   :  { %v178_v62 = vmax.f32 %v157_v57, 0.0  ;;  %v188_v37 = vmax.f32 %v186_v18, %v187_v28  ;;  %v300_v18 = vld [vmem:[%s769_s5 + $0x60] sm:$0xff] }
 0x111   :  { %v191_v6 = vrot.slane %v178_v62, 4  ;;  %v189_v49 = vrot.slane %v188_v37, 1 }
 0x113   :  { %v192_v14 = vmax.f32 %v178_v62, %v191_v6  ;;  %v296_v62 = vld [vmem:[%s769_s5 + $0x40] sm:$0xff] }
 0x114   :  { %v159_v55 = vpop.f32.mrf.mxu1  ;;  %346 = vperm.xlu2 %524, %v296_v62  }
 0x115   :  { %v160_v58 = vadd.f32 %v526_v54, %v159_v55  ;;  %v193_v24 = vrot.slane %v192_v14, 2 }
 0x117   :  { %v179_v63 = vmax.f32 %v160_v58, 0.0  ;;  %v194_v32 = vmax.f32 %v192_v14, %v193_v24  ;;  %v190_v58 = vmax.f32 %v188_v37, %v189_v49  ;;  %v299_v14 = vld [vmem:[%s769_s5 + $0x58] sm:$0xff]  ;;  %v288_v24 = vld [vmem:[%s769_s5] sm:$0xff] }
 0x119   :  { %v197_v10 = vrot.slane %v179_v63, 4  ;;  %v195_v44 = vrot.slane %v194_v32, 1 }
 0x11b   :  { %v198_v16 = vmax.f32 %v179_v63, %v197_v10 }
 0x11d   :  { %v199_v27 = vrot.slane %v198_v16, 2 }
 0x11f   :  { %v200_v35 = vmax.f32 %v198_v16, %v199_v27  ;;  %v303_v16 = vld [vmem:[%s769_s5 + $0x78] sm:$0xff] }
 0x121   :  { %v201_v47 = vrot.slane %v200_v35, 1 }
 0x122   :  { %v162_v56 = vpop.f32.mrf.mxu2 }
 0x123   :  { %v163_v60 = vadd.f32 %v526_v54, %v162_v56  ;;  %v202_v56 = vmax.f32 %v200_v35, %v201_v47  ;;  %v322_v35 = vpop.permute.xlu2 %321 }
 0x125   :  { %v180_v2 = vmax.f32 %v163_v60, 0.0 }
 0x127   :  { %v203_v12 = vrot.slane %v180_v2, 4 }
 0x129   :  { %v204_v19 = vmax.f32 %v180_v2, %v203_v12 }
 0x12a   :  { %v165_v53 = vpop.f32.mrf.mxu3 }
 0x12b   :  { %v166_v61 = vadd.f32 %v526_v54, %v165_v53  ;;  %v205_v29 = vrot.slane %v204_v19, 2  ;;  %v196_v53 = vmax.f32 %v194_v32, %v195_v44  ;;  %v312_v32 = vpop.permute.xlu1 %311 }
 0x12d   :  { %v181_v4 = vmax.f32 %v166_v61, 0.0  ;;  %v206_v38 = vmax.f32 %v204_v19, %v205_v29  ;;  %v295_v61 = vld [vmem:[%s769_s5 + $0x38] sm:$0xff] }
 0x12e   :  { %341 = vperm.xlu1 %523, %v295_v61  }
 0x12f   :  { %v209_v13 = vrot.slane %v181_v4, 4  ;;  %v207_v50 = vrot.slane %v206_v38, 1 }
 0x131   :  { %v210_v23 = vmax.f32 %v181_v4, %v209_v13  ;;  %v208_v59 = vmax.f32 %v206_v38, %v207_v50  ;;  %v297_v13 = vld [vmem:[%s769_s5 + $0x48] sm:$0xff]  ;;  %v327_v38 = vpop.permute.xlu2 %326 }
 0x132   :  { %v168_v0 = vpop.f32.mrf.mxu3 }
 0x133   :  { %v169_v3 = vadd.f32 %v526_v54, %v168_v0  ;;  %v211_v31 = vrot.slane %v210_v23, 2  ;;  %v242_v0 = vsel %vm241_vm1, %v196_v53, %v190_v58 }
 0x134   :  { %v244_v4 = vsel %vm243_vm2, %v202_v56, %v242_v0 }
 0x135   :  { %v182_v7 = vmax.f32 %v169_v3, 0.0  ;;  %v212_v43 = vmax.f32 %v210_v23, %v211_v31  ;;  %v246_v6 = vsel %vm245_vm3, %v208_v59, %v244_v4 }
 0x136   :  { %351 = vperm.xlu1 %523, %v297_v13  }
 0x137   :  { %v215_v15 = vrot.slane %v182_v7, 4  ;;  %v213_v52 = vrot.slane %v212_v43, 1 }
 0x139   :  { %v216_v25 = vmax.f32 %v182_v7, %v215_v15  ;;  %v214_v63 = vmax.f32 %v212_v43, %v213_v52  ;;  %v301_v15 = vld [vmem:[%s769_s5 + $0x68] sm:$0xff]  ;;  %v337_v41 = vpop.permute.xlu2 %336 }
 0x13a   :  { %v171_v17 = vpop.f32.mrf.mxu3 }
 0x13b   :  { %v172_v20 = vadd.f32 %v526_v54, %v171_v17  ;;  %v217_v33 = vrot.slane %v216_v25, 2  ;;  %v248_v7 = vsel %vm247_vm4, %v214_v63, %v246_v6  ;;  %v298_v17 = vld [vmem:[%s769_s5 + $0x50] sm:$0xff] }
 0x13c   :  { %356 = vperm.xlu2 %524, %v298_v17  }
 0x13d   :  { %v183_v26 = vmax.f32 %v172_v20, 0.0  ;;  %v218_v45 = vmax.f32 %v216_v25, %v217_v33 }
 0x13e   :  { %361 = vperm.xlu1 %523, %v299_v14  }
 0x13f   :  { %v221_v30 = vrot.slane %v183_v26, 4 }
 0x141   :  { %v222_v34 = vmax.f32 %v183_v26, %v221_v30 }
 0x142   :  { %v174_v36 = vpop.f32.mrf.mxu3 }
 0x143   :  { %v223_v39 = vrot.slane %v222_v34, 2  ;;  %v175_v40 = vadd.f32 %v526_v54, %v174_v36  ;;  %v219_v54 = vrot.slane %v218_v45, 1 }
 0x144   :  { %366 = vperm.xlu2 %524, %v300_v18  }
 0x145   :  { %v184_v46 = vmax.f32 %v175_v40, 0.0  ;;  %v224_v48 = vmax.f32 %v222_v34, %v223_v39  ;;  %v220_v1 = vmax.f32 %v218_v45, %v219_v54  ;;  %v317_v34 = vpop.permute.xlu1 %316 }
 0x146   :  { %371 = vperm.xlu1 %523, %v301_v15  }
 0x147   :  { %v227_v51 = vrot.slane %v184_v46, 4  ;;  %v225_v57 = vrot.slane %v224_v48, 1  ;;  %v250_v10 = vsel %vm249_vm5, %v220_v1, %v248_v7 }
 0x149   :  { %v228_v55 = vmax.f32 %v184_v46, %v227_v51  ;;  %v226_v3 = vmax.f32 %v224_v48, %v225_v57 }
 0x14b   :  { %v229_v60 = vrot.slane %v228_v55, 2  ;;  %v252_v11 = vsel %vm251_vm6, %v226_v3, %v250_v10 }
 0x14d   :  { %v230_v2 = vmax.f32 %v228_v55, %v229_v60  ;;  %v332_v37 = vpop.permute.xlu1 %331 }
 0x14e   :  { %381 = vperm.xlu1 %523, %v303_v16  }
 0x14f   :  { %v231_v5 = vrot.slane %v230_v2, 1 }
 0x151   :  { %v232_v9 = vmax.f32 %v230_v2, %v231_v5 }
 0x153   :  { %v254_v12 = vsel %vm253_vm7, %v232_v9, %v252_v11 }
 0x154   :  { %256 = vxpose.xlu0.b32.start.end [1/1] (short) %v254_v12, 128 }
 0x16e   :  { %v347_v44 = vpop.permute.xlu2 %346 }
 0x196   :  { %v357_v56 = vpop.permute.xlu2 %356 }
 0x19e   :  { %v367_v6 = vpop.permute.xlu2 %366 }
 0x1a0   :  { %v342_v40 = vpop.permute.xlu1 %341 }
 0x1a8   :  { %v352_v43 = vpop.permute.xlu1 %351 }
 0x1b0   :  { %v362_v52 = vpop.permute.xlu1 %361 }
 0x1b8   :  { %v372_v5 = vpop.permute.xlu1 %371 }
 0x1bb   :  { %522 = vset.pattern.permute.xlu0 %v557_v8  ;;  %v302_v8 = vld [vmem:[%s769_s5 + $0x70] sm:$0xff] }
 0x1bc   :  { %376 = vperm.xlu2 %524, %v302_v8  }
 0x1f8   :  { %v272_v19 = vpop.trf.xlu0 }
 0x200   :  { %v273_v20 = vpop.trf.xlu0 }
 0x201   :  { %v385_v45 = vmul.f32 %v312_v32, %v273_v20 }
 0x203   :  { %v402_v49 = vsel %vm400_vm8, %v385_v45, 0.0 }
 0x208   :  { %v274_v21 = vpop.trf.xlu0 }
 0x209   :  { %v386_v47 = vmul.f32 %v317_v34, %v274_v21 }
 0x20b   :  { %v404_v54 = vsel %vm400_vm8, %v386_v47, 0.0 }
 0x210   :  { %v275_v22 = vpop.trf.xlu0 }
 0x211   :  { %v387_v50 = vmul.f32 %v322_v35, %v275_v22 }
 0x213   :  { %v406_v58 = vsel %vm400_vm8, %v387_v50, 0.0 }
 0x216   :  { %v377_v20 = vpop.permute.xlu2 %376 }
 0x218   :  { %v276_v23 = vpop.trf.xlu0 }
 0x219   :  { %v388_v55 = vmul.f32 %v327_v38, %v276_v23  ;;  %v382_v23 = vpop.permute.xlu1 %381 }
 0x21b   :  { %v408_v61 = vsel %vm400_vm8, %v388_v55, 0.0 }
 0x220   :  { %v277_v25 = vpop.trf.xlu0 }
 0x221   :  { %v389_v59 = vmul.f32 %v332_v37, %v277_v25 }
 0x223   :  { %v410_v0 = vsel %vm400_vm8, %v389_v59, 0.0 }
 0x228   :  { %v278_v26 = vpop.trf.xlu0 }
 0x229   :  { %v390_v62 = vmul.f32 %v337_v41, %v278_v26 }
 0x22b   :  { %v412_v3 = vsel %vm400_vm8, %v390_v62, 0.0 }
 0x230   :  { %v279_v27 = vpop.trf.xlu0 }
 0x231   :  { %v391_v1 = vmul.f32 %v342_v40, %v279_v27 }
 0x233   :  { %v414_v9 = vsel %vm400_vm8, %v391_v1, 0.0 }
 0x238   :  { %v280_v28 = vpop.trf.xlu0 }
 0x239   :  { %v392_v4 = vmul.f32 %v347_v44, %v280_v28 }
 0x23a   :  { %306 = vperm.xlu0 %522, %v288_v24  }
 0x23b   :  { %v416_v12 = vsel %vm400_vm8, %v392_v4, 0.0 }
 0x240   :  { %v281_v29 = vpop.trf.xlu0 }
 0x241   :  { %v393_v10 = vmul.f32 %v352_v43, %v281_v29 }
 0x243   :  { %v418_v15 = vsel %vm400_vm8, %v393_v10, 0.0 }
 0x248   :  { %v282_v30 = vpop.trf.xlu0 }
 0x249   :  { %v394_v13 = vmul.f32 %v357_v56, %v282_v30 }
 0x24b   :  { %v420_v18 = vsel %vm400_vm8, %v394_v13, 0.0 }
 0x250   :  { %v283_v31 = vpop.trf.xlu0 }
 0x251   :  { %v395_v16 = vmul.f32 %v362_v52, %v283_v31 }
 0x253   :  { %v422_v21 = vsel %vm400_vm8, %v395_v16, 0.0 }
 0x258   :  { %v284_v33 = vpop.trf.xlu0 }
 0x260   :  { %v285_v36 = vpop.trf.xlu0 }
 0x261   :  { %v397_v22 = vmul.f32 %v372_v5, %v285_v36 }
 0x263   :  { %v426_v28 = vsel %vm400_vm8, %v397_v22, 0.0 }
 0x268   :  { %v286_v39 = vpop.trf.xlu0 }
 0x269   :  { %v398_v26 = vmul.f32 %v377_v20, %v286_v39  ;;  %v439_v39 = vstv %s770_s6  ;;  %s469_s6 = sshll.u32 %s771_s7, 4  ;;  %s470_s6 = int_to_ptr.hbm [resolvable:$true] %s469_s6 }
 0x26b   :  { %v428_v31 = vsel %vm400_vm8, %v398_v26, 0.0 }
 0x270   :  { %v287_v42 = vpop.trf.xlu0 }
 0x271   :  { %v399_v29 = vmul.f32 %v382_v23, %v287_v42 }
 0x2ac   :  { %v307_v46 = vpop.permute.xlu0 %306 }
 0x2ad   :  { %v384_v48 = vmul.f32 %v307_v46, %v272_v19  ;;  %v396_v19 = vmul.f32 %v367_v6, %v284_v33  ;;  %v430_v33 = vsel %vm400_vm8, %v399_v29, 0.0 }
 0x2af   :  { %v401_v51 = vsel %vm400_vm8, %v384_v48, 0.0  ;;  %v424_v25 = vsel %vm400_vm8, %v396_v19, 0.0 }
 0x2b0   :  { %v403_v53 = vadd.f32 %v402_v49, %v401_v51 }
 0x2b2   :  { %v405_v57 = vadd.f32 %v404_v54, %v403_v53 }
 0x2b4   :  { %v407_v60 = vadd.f32 %v406_v58, %v405_v57 }
 0x2b6   :  { %v409_v63 = vadd.f32 %v408_v61, %v407_v60 }
 0x2b8   :  { %v411_v2 = vadd.f32 %v410_v0, %v409_v63 }
 0x2ba   :  { %v413_v7 = vadd.f32 %v412_v3, %v411_v2 }
 0x2bc   :  { %v415_v11 = vadd.f32 %v414_v9, %v413_v7 }
 0x2be   :  { %v417_v14 = vadd.f32 %v416_v12, %v415_v11 }
 0x2c0   :  { %v419_v17 = vadd.f32 %v418_v15, %v417_v14 }
 0x2c2   :  { %v421_v8 = vadd.f32 %v420_v18, %v419_v17 }
 0x2c4   :  { %v423_v24 = vadd.f32 %v422_v21, %v421_v8 }
 0x2c6   :  { %v425_v27 = vadd.f32 %v424_v25, %v423_v24 }
 0x2c8   :  { %v427_v30 = vadd.f32 %v426_v28, %v425_v27 }
 0x2ca   :  { %v429_v32 = vadd.f32 %v428_v31, %v427_v30 }
 0x2cc   :  { %v431_v34 = vadd.f32 %v430_v33, %v429_v32 }
 0x2ce   :  { %v432_v35 = vrot.slane %v431_v34, 4 }
 0x2d0   :  { %v433_v37 = vadd.f32 %v432_v35, %v431_v34 }
 0x2d2   :  { %v434_v38 = vrot.slane %v433_v37, 2 }
 0x2d4   :  { %v435_v36 = vadd.f32 %v434_v38, %v433_v37 }
 0x2d6   :  { %v436_v40 = vrot.slane %v435_v36, 1 }
 0x2d8   :  { %v437_v41 = vadd.f32 %v436_v40, %v435_v36 }
 0x2da   :  { %v440_v43 = vadd.f32 %v439_v39, %v437_v41 }
 0x2dc   :  { %v486_v44 = vmul.f32 -1.442695, %v440_v43 }
 0x2de   :  { %527 = vpow2.f32 %v486_v44 }
 0x2e4   :  { %v528_v42 = vpop.eup %527 }
 0x2e5   :  { %v444_v45 = vadd.f32 1.0, %v528_v42 }
 0x2e7   :  { %529 = vrcp.f32 %v444_v45  ;;  %v456_v49 = vand.u32 2147483648, %v444_v45  ;;  %v454_v51 = vand.u32 2147483647, %v444_v45  ;;  %vm450_vm10 = vweird.f32 %v444_v45 }
 0x2e9   :  { %v457_v53 = vor.u32 1.1754944e-38, %v456_v49  ;;  %vm455_vm13 = vcmp.eq.f32.partialorder %v454_v51, 8.507059e+37 }
 0x2ed   :  { %v530_v46 = vpop.eup %529 }
 0x2ee   :  { %v446_v47 = vmul.f32 %v530_v46, %v444_v45  ;;  %vm451_vm9 = vweird.f32 %v530_v46 }
 0x2ef   :  { %vm452_vm11 = vmor %vm450_vm10, %vm451_vm9 }
 0x2f0   :  { %v447_v48 = vsub.f32 1.0, %v446_v47 }
 0x2f2   :  { %v448_v50 = vmul.f32 %v530_v46, %v447_v48 }
 0x2f4   :  { %v449_v52 = vadd.f32 %v530_v46, %v448_v50 }
 0x2f6   :  { %v453_v54 = vsel %vm452_vm11, %v530_v46, %v449_v52 }
 0x2f7   :  { %v458_v55 = vsel %vm455_vm13, %v457_v53, %v453_v54 }
 0x2f8   :  { %461 = vst.msk [vmem:[#allocation3] sm:$0x1] %vm460_vm12, %v458_v55 }
 0x2f9   :  { %472 = dma.vmem_to_hbm [thread:$0]  %s468_s1, 16, %s470_s6, [#allocation4]  }
 0x2fa   :  { %555 = dma.done.wait [#allocation4], 16  }
 0x2fb   :  { %556 = vsyncadd [#allocation4], 4294967280 }
 0x2fc   :  { %477 = vsyncpa [#allocation4], 1 }

</bundles_post_ra>
